<compile_context>
chip_gen: v7x
topology: tpu7x:2x2x1
jax: 0.10.0
libtpu: 0.0.40
codegen_flags: <defaults>
</compile_context>

<pallas_src>
import functools

import jax
import jax.numpy as jnp
from jax.experimental import pallas as pl
from jax.experimental.pallas import tpu as pltpu

PREDICTOR = "predictor"
GENERATOR = "generator"

_LANES = 128
_ROW_ALIGN = 16            # covers f32 (8,128) and bf16 (16,128) min tiles
_BLOCK_ROWS = 4096         # 4096x128 f32 = 2 MiB/block -> 8 MiB double-buffered
_DESIRED_SPARSITY = 10.0


def _loss_kernel(pred_ref, targ_ref, out_ref, acc_pred, acc_wmse, *,
                 alpha, n_elements, sign, block_rows, total_rows, need_mask):
    i = pl.program_id(0)

    @pl.when(i == 0)
    def _():
        acc_pred[...] = jnp.zeros_like(acc_pred)
        acc_wmse[...] = jnp.zeros_like(acc_wmse)

    # Upcast in-kernel (inputs stream in native dtype; bf16 halves HBM bytes).
    p = pred_ref[...].astype(jnp.float32)
    t = targ_ref[...].astype(jnp.float32)

    # Hot path: elementwise weighted MSE (VPU) hidden under the streaming DMA.
    diff = t - p
    wmse = diff * diff * (1.0 + alpha * t)

    if need_mask:
        # The last grid step's block extends past the (rows, 128) slab; those
        # out-of-bounds rows hold unspecified data -> zero them for both sums.
        # (For all earlier blocks the select is a no-op; cost is negligible
        # VPU work under the DMA.)
        row_ids = jax.lax.broadcasted_iota(jnp.int32, p.shape, 0) + i * block_rows
        valid = row_ids < total_rows
        p = jnp.where(valid, p, 0.0)
        wmse = jnp.where(valid, wmse, 0.0)

    # Per-block sublane reduce (VPU tree + one XLU fold) into lane-vector
    # accumulators; no per-step scalar dependency chain.
    acc_pred[...] += jnp.sum(p, axis=0, keepdims=True)
    acc_wmse[...] += jnp.sum(wmse, axis=0, keepdims=True)

    @pl.when(i == pl.num_programs(0) - 1)
    def _():
        sum_pred = jnp.sum(acc_pred[...])
        sum_wmse = jnp.sum(acc_wmse[...])
        sparsity_penalty = jnp.abs(sum_pred - _DESIRED_SPARSITY)
        mean_wmse = sum_wmse / jnp.float32(n_elements)
        out_ref[0, 0] = sign * mean_wmse + 0.1 * sparsity_penalty


def sparse_adversarial_gol_loss(prediction, target, model_type, alpha=9.0):
    if model_type == PREDICTOR:
        sign = 1.0
    elif model_type == GENERATOR:
        sign = -1.0
    else:
        raise ValueError(f"Invalid model type: {model_type}")

    n_elements = prediction.size
    p_flat = prediction.reshape(-1)
    t_flat = target.reshape(-1)

    # Minimal tail pad only when the flat size isn't a multiple of the minimal
    # (16, 128) tile; zero padding contributes nothing to either reduction.
    tile_elems = _ROW_ALIGN * _LANES
    n_pad = (-n_elements) % tile_elems
    if n_pad:
        p_flat = jnp.pad(p_flat, (0, n_pad))
        t_flat = jnp.pad(t_flat, (0, n_pad))

    rows = (n_elements + n_pad) // _LANES
    p2 = p_flat.reshape(rows, _LANES)   # contiguous reshape: no copy
    t2 = t_flat.reshape(rows, _LANES)

    block_rows = min(_BLOCK_ROWS, rows)       # rows is a multiple of 16
    n_tiles = pl.cdiv(rows, block_rows)
    need_mask = (rows % block_rows) != 0      # ragged last block handled in-kernel

    kernel = functools.partial(
        _loss_kernel,
        alpha=float(alpha),
        n_elements=float(n_elements),
        sign=float(sign),
        block_rows=block_rows,
        total_rows=rows,
        need_mask=need_mask,
    )

    out = pl.pallas_call(
        kernel,
        out_shape=jax.ShapeDtypeStruct((1, 1), jnp.float32),
        grid_spec=pltpu.PrefetchScalarGridSpec(
            num_scalar_prefetch=0,
            grid=(n_tiles,),
            in_specs=[
                pl.BlockSpec((block_rows, _LANES), lambda i: (i, 0)),
                pl.BlockSpec((block_rows, _LANES), lambda i: (i, 0)),
            ],
            out_specs=pl.BlockSpec(
                (1, 1), lambda i: (0, 0), memory_space=pltpu.SMEM
            ),
            scratch_shapes=[
                pltpu.VMEM((1, _LANES), jnp.float32),
                pltpu.VMEM((1, _LANES), jnp.float32),
            ],
        ),
        compiler_params=pltpu.CompilerParams(
            dimension_semantics=("arbitrary",),
            vmem_limit_bytes=32 * 1024 * 1024,
        ),
    )(p2, t2)
    return out[0, 0]


def _reference_loss(prediction, target, model_type, alpha=9.0):
    sparsity_penalty = jnp.abs(jnp.sum(prediction) - _DESIRED_SPARSITY)
    wmse = (target - prediction) ** 2 * (1.0 + alpha * target)
    mean = jnp.mean(wmse)
    if model_type == PREDICTOR:
        return mean + 0.1 * sparsity_penalty
    return -mean + 0.1 * sparsity_penalty


if __name__ == "__main__":
    key = jax.random.PRNGKey(0)

    ok = True
    # (2,4,16,16): tile-aligned (no host pad). (2,1,20,20): exercises the
    # minimal-tail-pad path.
    for shape in ((2, 4, 16, 16), (2, 1, 20, 20)):
        key, k1, k2 = jax.random.split(key, 3)
        prediction = jax.random.uniform(k1, shape, dtype=jnp.float32)
        target = (jax.random.uniform(k2, shape) > 0.9).astype(jnp.float32)

        for model_type in (PREDICTOR, GENERATOR):
            loss = sparse_adversarial_gol_loss(prediction, target, model_type)
            loss = jax.block_until_ready(loss)
            ref = _reference_loss(prediction, target, model_type)
            if not jnp.allclose(loss, ref, rtol=1e-5, atol=1e-5):
                ok = False

    if ok:
        print("KERNEL_OK")
</pallas_src>

<mosaic_0001>
module attributes {stable_mosaic.version = 11 : i64} {
  func.func @_loss_kernel(%arg0: i32, %arg1: memref<16x128xf32, #tpu.memory_space<vmem>>, %arg2: memref<16x128xf32, #tpu.memory_space<vmem>>, %arg3: memref<1x1xf32, #tpu.memory_space<smem>>, %arg4: memref<1x128xf32, #tpu.memory_space<vmem>>, %arg5: memref<1x128xf32, #tpu.memory_space<vmem>>) attributes {dimension_semantics = [#tpu.dimension_semantics<arbitrary>], iteration_bounds = array<i64: 1>, scalar_prefetch = 0 : i64, scratch_operands = 2 : i64, tpu.core_type = #tpu.core_type<tc>, window_params = [{transform_indices = @transform_0, window_bounds = array<i64: 16, 128>}, {transform_indices = @transform_1, window_bounds = array<i64: 16, 128>}, {transform_indices = @transform_2, window_bounds = array<i64: 1, 1>}]} {
    %c0_i32 = arith.constant 0 : i32
    %0 = arith.cmpi eq, %arg0, %c0_i32 : i32
    %1 = arith.extui %0 : i1 to i32
    %c0_i32_0 = arith.constant 0 : i32
    %2 = arith.cmpi ne, %1, %c0_i32_0 : i32
    scf.if %2 {
      %cst_17 = arith.constant 0.000000e+00 : f32
      %25 = vector.broadcast %cst_17 : f32 to vector<1x128xf32>
      %c0_18 = arith.constant 0 : index
      %c0_19 = arith.constant 0 : index
      %26 = vector.load %arg4[%c0_18, %c0_19] : memref<1x128xf32, #tpu.memory_space<vmem>>, vector<1x128xf32>
      tpu.vector_store %arg4[%c0_18, %c0_19], %25 {strides = array<i32>} : memref<1x128xf32, #tpu.memory_space<vmem>>, vector<1x128xf32>,
      %cst_20 = arith.constant 0.000000e+00 : f32
      %27 = vector.broadcast %cst_20 : f32 to vector<1x128xf32>
      %c0_21 = arith.constant 0 : index
      %c0_22 = arith.constant 0 : index
      %28 = vector.load %arg5[%c0_21, %c0_22] : memref<1x128xf32, #tpu.memory_space<vmem>>, vector<1x128xf32>
      tpu.vector_store %arg5[%c0_21, %c0_22], %27 {strides = array<i32>} : memref<1x128xf32, #tpu.memory_space<vmem>>, vector<1x128xf32>,
    } else {
    }
    %c0 = arith.constant 0 : index
    %c0_1 = arith.constant 0 : index
    %3 = vector.load %arg1[%c0, %c0_1] : memref<16x128xf32, #tpu.memory_space<vmem>>, vector<16x128xf32>
    %c0_2 = arith.constant 0 : index
    %c0_3 = arith.constant 0 : index
    %4 = vector.load %arg2[%c0_2, %c0_3] : memref<16x128xf32, #tpu.memory_space<vmem>>, vector<16x128xf32>
    %5 = arith.subf %4, %3 : vector<16x128xf32>
    %6 = arith.mulf %5, %5 : vector<16x128xf32>
    %cst = arith.constant 9.000000e+00 : f32
    %7 = vector.broadcast %cst : f32 to vector<16x128xf32>
    %8 = arith.mulf %7, %4 : vector<16x128xf32>
    %cst_4 = arith.constant 1.000000e+00 : f32
    %9 = vector.broadcast %cst_4 : f32 to vector<16x128xf32>
    %10 = arith.addf %9, %8 : vector<16x128xf32>
    %11 = arith.mulf %6, %10 : vector<16x128xf32>
    %c0_5 = arith.constant 0 : index
    %c0_6 = arith.constant 0 : index
    %12 = vector.load %arg4[%c0_5, %c0_6] : memref<1x128xf32, #tpu.memory_space<vmem>>, vector<1x128xf32>
    %cst_7 = arith.constant dense<0.000000e+00> : vector<128xf32>
    %13 = vector.multi_reduction <add>, %3, %cst_7 [0] : vector<16x128xf32> to vector<128xf32>
    %14 = vector.shape_cast %13 : vector<128xf32> to vector<1x128xf32>
    %15 = arith.addf %12, %14 : vector<1x128xf32>
    %c0_8 = arith.constant 0 : index
    %c0_9 = arith.constant 0 : index
    %16 = vector.load %arg4[%c0_8, %c0_9] : memref<1x128xf32, #tpu.memory_space<vmem>>, vector<1x128xf32>
    tpu.vector_store %arg4[%c0_8, %c0_9], %15 {strides = array<i32>} : memref<1x128xf32, #tpu.memory_space<vmem>>, vector<1x128xf32>,
    %c0_10 = arith.constant 0 : index
    %c0_11 = arith.constant 0 : index
    %17 = vector.load %arg5[%c0_10, %c0_11] : memref<1x128xf32, #tpu.memory_space<vmem>>, vector<1x128xf32>
    %cst_12 = arith.constant dense<0.000000e+00> : vector<128xf32>
    %18 = vector.multi_reduction <add>, %11, %cst_12 [0] : vector<16x128xf32> to vector<128xf32>
    %19 = vector.shape_cast %18 : vector<128xf32> to vector<1x128xf32>
    %20 = arith.addf %17, %19 : vector<1x128xf32>
    %c0_13 = arith.constant 0 : index
    %c0_14 = arith.constant 0 : index
    %21 = vector.load %arg5[%c0_13, %c0_14] : memref<1x128xf32, #tpu.memory_space<vmem>>, vector<1x128xf32>
    tpu.vector_store %arg5[%c0_13, %c0_14], %20 {strides = array<i32>} : memref<1x128xf32, #tpu.memory_space<vmem>>, vector<1x128xf32>,
    %c0_i32_15 = arith.constant 0 : i32
    %22 = arith.cmpi eq, %arg0, %c0_i32_15 : i32
    %23 = arith.extui %22 : i1 to i32
    %c0_i32_16 = arith.constant 0 : i32
    %24 = arith.cmpi ne, %23, %c0_i32_16 : i32
    scf.if %24 {
      %c0_17 = arith.constant 0 : index
      %c0_18 = arith.constant 0 : index
      %25 = vector.load %arg4[%c0_17, %c0_18] : memref<1x128xf32, #tpu.memory_space<vmem>>, vector<1x128xf32>
      %26 = vector.shape_cast %25 : vector<1x128xf32> to vector<1x1x128xf32>
      %cst_19 = arith.constant dense<0.000000e+00> : vector<1xf32>
      %27 = vector.multi_reduction <add>, %26, %cst_19 [1, 2] : vector<1x1x128xf32> to vector<1xf32>
      %28 = vector.shape_cast %27 : vector<1xf32> to vector<1x1x1xf32>
      %29 = vector.extract %28[0, 0, 0] : f32 from vector<1x1x1xf32>
      %c0_20 = arith.constant 0 : index
      %c0_21 = arith.constant 0 : index
      %30 = vector.load %arg5[%c0_20, %c0_21] : memref<1x128xf32, #tpu.memory_space<vmem>>, vector<1x128xf32>
      %31 = vector.shape_cast %30 : vector<1x128xf32> to vector<1x1x128xf32>
      %cst_22 = arith.constant dense<0.000000e+00> : vector<1xf32>
      %32 = vector.multi_reduction <add>, %31, %cst_22 [1, 2] : vector<1x1x128xf32> to vector<1xf32>
      %33 = vector.shape_cast %32 : vector<1xf32> to vector<1x1x1xf32>
      %34 = vector.extract %33[0, 0, 0] : f32 from vector<1x1x1xf32>
      %cst_23 = arith.constant 1.000000e+01 : f32
      %35 = arith.subf %29, %cst_23 : f32
      %36 = math.absf %35 : f32
      %cst_24 = arith.constant 2.048000e+03 : f32
      %37 = arith.divf %34, %cst_24 : f32
      %cst_25 = arith.constant 1.000000e+00 : f32
      %38 = arith.mulf %cst_25, %37 : f32
      %cst_26 = arith.constant 1.000000e-01 : f32
      %39 = arith.mulf %cst_26, %36 : f32
      %40 = arith.addf %38, %39 : f32
      %c0_27 = arith.constant 0 : index
      %c0_28 = arith.constant 0 : index
      %41 = memref.load %arg3[%c0_27, %c0_28] : memref<1x1xf32, #tpu.memory_space<smem>>
      memref.store %40, %arg3[%c0_27, %c0_28] : memref<1x1xf32, #tpu.memory_space<smem>>
    } else {
    }
    return
  }
  func.func @transform_0(%arg0: i32) -> (i32, i32) {
    %c0_i32 = arith.constant 0 : i32
    %c0_i32_0 = arith.constant 0 : i32
    return %arg0, %c0_i32 : i32, i32
  }
  func.func @transform_1(%arg0: i32) -> (i32, i32) {
    %c0_i32 = arith.constant 0 : i32
    %c0_i32_0 = arith.constant 0 : i32
    return %arg0, %c0_i32 : i32, i32
  }
  func.func @transform_2(%arg0: i32) -> (i32, i32) {
    %c0_i32 = arith.constant 0 : i32
    %c0_i32_0 = arith.constant 0 : i32
    %c0_i32_1 = arith.constant 0 : i32
    return %c0_i32, %c0_i32_0 : i32, i32
  }
}

</mosaic_0001>

<bundles_post_ra>
// kernel: tpu_custom_call.1
= control target key start
LH: loop header
LB: loop body
LE: loop exit
PB: predicated region body
PF: predicated region fallthrough
CT: control target
= control target key end

     0   :  { %7 = vsyncpa [#allocation5], 0  ;;  %s258_s0 = inlined_call_operand.hbm [shape: f32[16,128], index: 0, kind: input, shape index: {}]   ;;  %s259_s1 = inlined_call_operand.hbm [shape: f32[16,128], index: 1, kind: input, shape index: {}]   ;;  %s260_s2 = inlined_call_operand.hbm [shape: f32[1,1], index: 2, kind: output, shape index: {}]  }
   0x1   :  { %8 = vsyncpa [#allocation8], 0 }
   0x2   :  { %9 = vsyncpa [#allocation6], 0  ;;  %s201_s9 = smov [#allocation4]   ;;  %s141_s13 = scalar_lea.hbm %s258_s0, 256 }
   0x3   :  { %s15_s10 = sshll.u32 %s201_s9, 4  ;;  %p142_p0 = scmp.ne.s32.totalorder %s258_s0, %s141_s13  ;;  %s16_s10 = int_to_ptr.vmem [resolvable:$true] %s15_s10 }
   0x4   :  { %p145_p1 = scmp.lt.u32.totalorder %s141_s13, %s258_s0 }
   0x6   :  { %p147_p2 = pnand %p145_p1, %p142_p0 }
   0x8   :  { %150 = shalt.err (!%p147_p2)
}
   0x9   :  { %s151_s18 = scalar_lea.vmem %s16_s10, 256  ;;  %p156_p4 = scmp.lt.s32.totalorder %s16_s10, %s16_s10 }
   0xa   :  { %p152_p3 = scmp.ne.s32.totalorder %s16_s10, %s151_s18  ;;  %p157_p5 = scmp.lt.s32.totalorder %s151_s18, %s151_s18 }
   0xc   :  { %p158_p6 = por %p157_p5, %p156_p4 }
   0xe   :  { %p159_p7 = pnand %p158_p6, %p152_p3 }
  0x10   :  { %162 = shalt.err (!%p159_p7)
}
  0x11   :  { %s202_s19 = smov 128   ;;  %s203_s20 = smov 8  }
  0x12   :  { %21 = dma.hbm_to_vmem [thread:$0]  %s258_s0, 256, %s16_s10, [#allocation5], %s202_s19, %s202_s19, %s203_s20  }
  0x13   :  { %s204_s23 = smov [#allocation7]   ;;  %s163_s27 = scalar_lea.hbm %s259_s1, 256 }
  0x14   :  { %s27_s24 = sshll.u32 %s204_s23, 4  ;;  %p164_p8 = scmp.ne.s32.totalorder %s259_s1, %s163_s27  ;;  %s28_s24 = int_to_ptr.vmem [resolvable:$true] %s27_s24 }
  0x15   :  { %p167_p9 = scmp.lt.u32.totalorder %s163_s27, %s259_s1 }
  0x17   :  { %p169_p10 = pnand %p167_p9, %p164_p8 }
  0x19   :  { %172 = shalt.err (!%p169_p10)
}
  0x1a   :  { %s173_s4 = scalar_lea.vmem %s28_s24, 256  ;;  %p178_p12 = scmp.lt.s32.totalorder %s28_s24, %s28_s24 }
  0x1b   :  { %p174_p11 = scmp.ne.s32.totalorder %s28_s24, %s173_s4  ;;  %p179_p13 = scmp.lt.s32.totalorder %s173_s4, %s173_s4 }
  0x1d   :  { %p180_p0 = por %p179_p13, %p178_p12 }
  0x1f   :  { %p181_p1 = pnand %p180_p0, %p174_p11 }
  0x21   :  { %184 = shalt.err (!%p181_p1)
}
  0x22   :  { %33 = dma.hbm_to_vmem [thread:$0]  %s259_s1, 256, %s28_s24, [#allocation8], %s202_s19, %s202_s19, %s203_s20  }
  0x23   :  { %195 = dma.done.wait [#allocation5], 256  }
  0x24   :  { %196 = vsyncadd [#allocation5], 4294967040 }
  0x25   :  { %197 = dma.done.wait [#allocation8], 256  }
  0x26   :  { %198 = vsyncadd [#allocation8], 4294967040  ;;  %v205_v0 = vmov 0.0   ;;  %v46_v1 = vld [vmem:[#allocation4] sm:$0xff]  ;;  %v47_v2 = vld [vmem:[#allocation4 + $0x8] sm:$0xff]  ;;  %vm84_vm0 = vcmask 1040384  }
  0x27   :  { %44 = vst [vmem:[#allocation2] sm:$0x1] %v205_v0  ;;  %45 = vst [vmem:[#allocation3] sm:$0x1] %v205_v0  ;;  %v48_v3 = vld [vmem:[#allocation7] sm:$0xff]  ;;  %v49_v4 = vld [vmem:[#allocation7 + $0x8] sm:$0xff]  ;;  %v61_v7 = vadd.f32 %v47_v2, %v46_v1 }
  0x28   :  { %v50_v5 = vsub.f32 %v48_v3, %v46_v1  ;;  %v54_v6 = vmul.f32 9.0, %v48_v3  ;;  %v51_v8 = vsub.f32 %v49_v4, %v47_v2  ;;  %v55_v9 = vmul.f32 9.0, %v49_v4  ;;  %s185_s14 = scalar_lea.hbm %s260_s2, 16 }
  0x29   :  { %v62_v12 = vrot.slane %v61_v7, 4  ;;  %p186_p2 = scmp.ne.s32.totalorder %s260_s2, %s185_s14  ;;  %p189_p3 = scmp.lt.u32.totalorder %s185_s14, %s260_s2 }
  0x2a   :  { %v52_v10 = vmul.f32 %v50_v5, %v50_v5  ;;  %v56_v11 = vadd.f32 1.0, %v54_v6  ;;  %v53_v13 = vmul.f32 %v51_v8, %v51_v8  ;;  %v57_v14 = vadd.f32 1.0, %v55_v9 }
  0x2b   :  { %v63_v15 = vadd.f32 %v62_v12, %v61_v7  ;;  %p191_p4 = pnand %p189_p3, %p186_p2 }
  0x2c   :  { %v58_v16 = vmul.f32 %v56_v11, %v52_v10  ;;  %v59_v17 = vmul.f32 %v57_v14, %v53_v13 }
  0x2d   :  { %v64_v18 = vrot.slane %v63_v15, 2 }
  0x2e   :  { %v71_v19 = vadd.f32 %v59_v17, %v58_v16  ;;  %v60_v23 = vld [vmem:[#allocation2] sm:$0x1]  ;;  %v70_v30 = vld [vmem:[#allocation3] sm:$0x1] }
  0x2f   :  { %v65_v20 = vadd.f32 %v64_v18, %v63_v15 }
  0x30   :  { %v72_v21 = vrot.slane %v71_v19, 4 }
  0x31   :  { %v66_v22 = vrot.slane %v65_v20, 1 }
  0x32   :  { %v73_v24 = vadd.f32 %v72_v21, %v71_v19 }
  0x33   :  { %v67_v25 = vadd.f32 %v66_v22, %v65_v20 }
  0x34   :  { %v74_v26 = vrot.slane %v73_v24, 2 }
  0x35   :  { %v68_v27 = vadd.f32 %v67_v25, %v60_v23 }
  0x36   :  { %v75_v28 = vadd.f32 %v74_v26, %v73_v24 }
  0x37   :  { %69 = vst [vmem:[#allocation2] sm:$0x1] %v68_v27 }
  0x38   :  { %v76_v29 = vrot.slane %v75_v28, 1 }
  0x3a   :  { %v77_v31 = vadd.f32 %v76_v29, %v75_v28 }
  0x3c   :  { %v78_v32 = vadd.f32 %v77_v31, %v70_v30 }
  0x3e   :  { %v83_v33 = vld [vmem:[#allocation2] sm:$0x1]  ;;  %79 = vst [vmem:[#allocation3] sm:$0x1] %v78_v32 }
  0x3f   :  { %v85_v34 = vsel %vm84_vm0, %v83_v33, 0.0 }
  0x40   :  { %86 = vadd.xlane.f32.xlu0 %v85_v34 }
  0x45   :  { %v95_v35 = vld [vmem:[#allocation3] sm:$0x1] }
  0x46   :  { %v96_v36 = vsel %vm84_vm0, %v95_v35, 0.0 }
  0x47   :  { %97 = vadd.xlane.f32.xlu0 %v96_v36 }
  0xcd   :  { %v87_v37 = vpop.xlane.xlu0 %86 }
  0xce   :  { %v88_v38 = vrot.slane %v87_v37, 4 }
  0xd0   :  { %v89_v39 = vadd.f32 %v88_v38, %v87_v37 }
  0xd2   :  { %v90_v40 = vrot.slane %v89_v39, 2 }
  0xd4   :  { %v98_v41 = vpop.xlane.xlu0 %97  ;;  %v91_v42 = vadd.f32 %v90_v40, %v89_v39 }
  0xd5   :  { %v99_v43 = vrot.slane %v98_v41, 4 }
  0xd6   :  { %v92_v44 = vrot.slane %v91_v42, 1 }
  0xd7   :  { %v100_v45 = vadd.f32 %v99_v43, %v98_v41 }
  0xd8   :  { %v93_v46 = vadd.f32 %v92_v44, %v91_v42 }
  0xd9   :  { %v101_v47 = vrot.slane %v100_v45, 2 }
  0xda   :  { %131 = vpush %v93_v46 }
  0xdb   :  { %v102_v48 = vadd.f32 %v101_v47, %v100_v45 }
  0xdd   :  { %v103_v49 = vrot.slane %v102_v48, 1 }
  0xdf   :  { %v104_v50 = vadd.f32 %v103_v49, %v102_v48 }
  0xe1   :  { %133 = vpush %v104_v50 }
 0x10b   :  { %s132_s1 = spop %131 }
 0x10c   :  { %s130_s6 = sadd.f32 -10.0, %s132_s1 }
 0x10e   :  { %s107_s7 = sand.u32 2147483647, %s130_s6 }
 0x10f   :  { %s111_s8 = smul.f32 0.1, %s107_s7 }
 0x112   :  { %s134_s9 = spop %133 }
 0x113   :  { %s110_s10 = smul.f32 0.00048828125, %s134_s9 }
 0x115   :  { %s112_s11 = sadd.f32 %s111_s8, %s110_s10 }
 0x117   :  { %114 = sst [smem:[#allocation9]] %s112_s11 }
 0x118   :  { %194 = shalt.err (!%p191_p4)
}
 0x119   :  { %s206_s19 = smov [#allocation9]  }
 0x11a   :  { %122 = dma.smem_to_hbm %s206_s19, 16, %s260_s2, [#allocation6]  }
 0x11b   :  { %199 = dma.done.wait [#allocation6], 16  }
 0x11c   :  { %200 = vsyncadd [#allocation6], 4294967280 }
 0x11d   :  { %126 = sfence }
 0x11e   :  { %127 = vsyncpa [#allocation5], 1 }
 0x11f   :  { %128 = vsyncpa [#allocation8], 1 }
 0x120   :  { %129 = vsyncpa [#allocation6], 1 }

</bundles_post_ra>
